<compile_context>
chip_gen: v5e
topology: v5e:2x2
jax: 0.10.0
libtpu: 0.0.40
codegen_flags: <defaults>
</compile_context>

<pallas_src>
import math

import jax
import jax.numpy as jnp
from jax.experimental import pallas as pl
from jax.experimental.pallas import tpu as pltpu


def _round_up(x, m):
    return ((x + m - 1) // m) * m


def _decoder_kernel(x_ref,
                    w1_ref, b1_ref, s1_ref, t1_ref,
                    w2_ref, b2_ref, s2_ref, t2_ref,
                    w3_ref, b3_ref,
                    out_ref):
    """One batch tile. x_ref: [in1, TM]; out_ref: [d3, TM]; params broadcast over lanes."""
    x = x_ref[...]

    # layer4 = tanh(BN1(Linear1(hidden)))
    h = jnp.dot(w1_ref[...], x, preferred_element_type=jnp.float32)      # [d1, TM]
    h = jnp.tanh((h + b1_ref[...]) * s1_ref[...] + t1_ref[...])

    # layer5 = tanh(BN2(Linear2(layer4)))
    h = jnp.dot(w2_ref[...], h, preferred_element_type=jnp.float32)      # [d2, TM]
    h = jnp.tanh((h + b2_ref[...]) * s2_ref[...] + t2_ref[...])

    # layer6 = Linear3(layer5)
    out = jnp.dot(w3_ref[...], h, preferred_element_type=jnp.float32) + b3_ref[...]
    out_ref[...] = out.astype(out_ref.dtype)


def mask_gene_decoder_bn_tanh_con_2layer(hidden, params, *, tile_m=512, eps=1e-5):
    """hidden: [B, in1] f32. params: PyTorch-layout weights/biases + BN running stats."""
    B, in1 = hidden.shape
    w1, b1 = params["w1"], params["b1"]            # [d1, in1], [d1]
    w2, b2 = params["w2"], params["b2"]            # [d2, d1],  [d2]
    w3, b3 = params["w3"], params["b3"]            # [d3, d2],  [d3]
    d1, d2, d3 = w1.shape[0], w2.shape[0], w3.shape[0]
    assert w1.shape == (d1, in1) and w2.shape == (d2, d1) and w3.shape == (d3, d2)

    # Fold inference-mode BatchNorm into a per-feature scale/shift.
    s1 = params["g1"] / jnp.sqrt(params["var1"] + eps)
    t1 = params["beta1"] - params["mean1"] * s1
    s2 = params["g2"] / jnp.sqrt(params["var2"] + eps)
    t2 = params["beta2"] - params["mean2"] * s2

    # Per-feature vectors as [d, 1] columns so they broadcast over the lane
    # (batch) axis inside the kernel.
    def col(v):
        return v.reshape(-1, 1).astype(jnp.float32)

    b1c, s1c, t1c = col(b1), col(s1), col(t1)
    b2c, s2c, t2c = col(b2), col(s2), col(t2)
    b3c = col(b3)

    # Batch tile on the lane axis: multiple of 128 for unmasked lane-dense
    # loads/stores; pad the batch up to a whole number of tiles.
    tm = min(tile_m, _round_up(B, 128))
    b_pad = _round_up(B, tm)
    x_t = jnp.transpose(hidden.astype(jnp.float32))                       # [in1, B]
    if b_pad != B:
        x_t = jnp.pad(x_t, ((0, 0), (0, b_pad - B)))

    grid = (pl.cdiv(b_pad, tm),)
    const = lambda i: (0, 0)                 # weights / BN params: VMEM-resident

    out_t = pl.pallas_call(
        _decoder_kernel,
        out_shape=jax.ShapeDtypeStruct((d3, b_pad), jnp.float32),
        grid=grid,
        in_specs=[
            pl.BlockSpec((in1, tm), lambda i: (0, i)),   # activations: tiled over batch
            pl.BlockSpec((d1, in1), const),
            pl.BlockSpec((d1, 1), const),
            pl.BlockSpec((d1, 1), const),
            pl.BlockSpec((d1, 1), const),
            pl.BlockSpec((d2, d1), const),
            pl.BlockSpec((d2, 1), const),
            pl.BlockSpec((d2, 1), const),
            pl.BlockSpec((d2, 1), const),
            pl.BlockSpec((d3, d2), const),
            pl.BlockSpec((d3, 1), const),
        ],
        out_specs=pl.BlockSpec((d3, tm), lambda i: (0, i)),
        compiler_params=pltpu.CompilerParams(
            dimension_semantics=("parallel",),           # shard tiles across TCs on v7x
            vmem_limit_bytes=32 * 1024 * 1024,           # safe on v5e/v6e/v7x; usage is KBs
        ),
    )(x_t,
      w1.astype(jnp.float32), b1c, s1c, t1c,
      w2.astype(jnp.float32), b2c, s2c, t2c,
      w3.astype(jnp.float32), b3c)

    return jnp.transpose(out_t)[:B]


def _reference(hidden, params, eps=1e-5):
    def linear(x, w, b):
        return x @ w.T + b

    def bn(x, g, be, m, v):
        return (x - m) / jnp.sqrt(v + eps) * g + be

    h = jnp.tanh(bn(linear(hidden, params["w1"], params["b1"]),
                    params["g1"], params["beta1"], params["mean1"], params["var1"]))
    h = jnp.tanh(bn(linear(h, params["w2"], params["b2"]),
                    params["g2"], params["beta2"], params["mean2"], params["var2"]))
    return linear(h, params["w3"], params["b3"])


if __name__ == "__main__":
    # params['inputs'] / params['outputs'] analogue; the decoder uses indices 3..5.
    inputs = [32, 64, 48, 32, 16, 32, 48, 64]
    outputs = [64, 48, 32, 16, 32, 48, 64, 32]
    batch = 8

    in1, d1 = inputs[3], outputs[3]     # Linear1: 32 -> 16
    in2, d2 = inputs[4], outputs[4]     # Linear2: 16 -> 32
    in3, d3 = inputs[5], outputs[5]     # Linear3: 32 -> 48
    assert d1 == in2 and d2 == in3

    key = jax.random.PRNGKey(0)
    ks = jax.random.split(key, 15)

    def linear_init(kw, kb, out_f, in_f):
        bound = 1.0 / math.sqrt(in_f)
        w = jax.random.uniform(kw, (out_f, in_f), jnp.float32, -bound, bound)
        b = jax.random.uniform(kb, (out_f,), jnp.float32, -bound, bound)
        return w, b

    w1, b1 = linear_init(ks[0], ks[1], d1, in1)
    w2, b2 = linear_init(ks[2], ks[3], d2, in2)
    w3, b3 = linear_init(ks[4], ks[5], d3, in3)

    params = dict(
        w1=w1, b1=b1, w2=w2, b2=b2, w3=w3, b3=b3,
        g1=jax.random.uniform(ks[6], (d1,), jnp.float32, 0.5, 1.5),
        beta1=jax.random.normal(ks[7], (d1,), jnp.float32) * 0.1,
        mean1=jax.random.normal(ks[8], (d1,), jnp.float32) * 0.1,
        var1=jax.random.uniform(ks[9], (d1,), jnp.float32, 0.5, 1.5),
        g2=jax.random.uniform(ks[10], (d2,), jnp.float32, 0.5, 1.5),
        beta2=jax.random.normal(ks[11], (d2,), jnp.float32) * 0.1,
        mean2=jax.random.normal(ks[12], (d2,), jnp.float32) * 0.1,
        var2=jax.random.uniform(ks[13], (d2,), jnp.float32, 0.5, 1.5),
    )

    hidden = jax.random.normal(ks[14], (batch, in1), jnp.float32)

    out = mask_gene_decoder_bn_tanh_con_2layer(hidden, params)
    jax.block_until_ready(out)

    ref = _reference(hidden, params)
    assert out.shape == (batch, d3)
    max_err = float(jnp.max(jnp.abs(out - ref)))
    assert jnp.allclose(out, ref, atol=1e-4, rtol=1e-4), max_err

    print("KERNEL_OK")
</pallas_src>

<mosaic_0001>
module attributes {stable_mosaic.version = 11 : i64} {
  func.func @_decoder_kernel(%arg0: i32, %arg1: memref<32x128xf32, #tpu.memory_space<vmem>>, %arg2: memref<16x32xf32, #tpu.memory_space<vmem>>, %arg3: memref<16x1xf32, #tpu.memory_space<vmem>>, %arg4: memref<16x1xf32, #tpu.memory_space<vmem>>, %arg5: memref<16x1xf32, #tpu.memory_space<vmem>>, %arg6: memref<32x16xf32, #tpu.memory_space<vmem>>, %arg7: memref<32x1xf32, #tpu.memory_space<vmem>>, %arg8: memref<32x1xf32, #tpu.memory_space<vmem>>, %arg9: memref<32x1xf32, #tpu.memory_space<vmem>>, %arg10: memref<48x32xf32, #tpu.memory_space<vmem>>, %arg11: memref<48x1xf32, #tpu.memory_space<vmem>>, %arg12: memref<48x128xf32, #tpu.memory_space<vmem>>) attributes {dimension_semantics = [#tpu.dimension_semantics<parallel>], iteration_bounds = array<i64: 1>, scalar_prefetch = 0 : i64, scratch_operands = 0 : i64, tpu.core_type = #tpu.core_type<tc>, window_params = [{transform_indices = @transform_0, window_bounds = array<i64: 32, 128>}, {pipeline_mode = #tpu.pipeline_mode<synchronous>, transform_indices = @transform_1, window_bounds = array<i64: 16, 32>}, {pipeline_mode = #tpu.pipeline_mode<synchronous>, transform_indices = @transform_2, window_bounds = array<i64: 16, 1>}, {pipeline_mode = #tpu.pipeline_mode<synchronous>, transform_indices = @transform_3, window_bounds = array<i64: 16, 1>}, {pipeline_mode = #tpu.pipeline_mode<synchronous>, transform_indices = @transform_4, window_bounds = array<i64: 16, 1>}, {pipeline_mode = #tpu.pipeline_mode<synchronous>, transform_indices = @transform_5, window_bounds = array<i64: 32, 16>}, {pipeline_mode = #tpu.pipeline_mode<synchronous>, transform_indices = @transform_6, window_bounds = array<i64: 32, 1>}, {pipeline_mode = #tpu.pipeline_mode<synchronous>, transform_indices = @transform_7, window_bounds = array<i64: 32, 1>}, {pipeline_mode = #tpu.pipeline_mode<synchronous>, transform_indices = @transform_8, window_bounds = array<i64: 32, 1>}, {pipeline_mode = #tpu.pipeline_mode<synchronous>, transform_indices = @transform_9, window_bounds = array<i64: 48, 32>}, {pipeline_mode = #tpu.pipeline_mode<synchronous>, transform_indices = @transform_10, window_bounds = array<i64: 48, 1>}, {transform_indices = @transform_11, window_bounds = array<i64: 48, 128>}]} {
    %c0 = arith.constant 0 : index
    %c0_0 = arith.constant 0 : index
    %0 = vector.load %arg1[%c0, %c0_0] : memref<32x128xf32, #tpu.memory_space<vmem>>, vector<32x128xf32>
    %c0_1 = arith.constant 0 : index
    %c0_2 = arith.constant 0 : index
    %1 = vector.load %arg2[%c0_1, %c0_2] : memref<16x32xf32, #tpu.memory_space<vmem>>, vector<16x32xf32>
    %cst = arith.constant dense<0.000000e+00> : vector<16x128xf32>
    %2 = tpu.matmul %1, %0, %cst {dimension_numbers = #tpu.dot_dimension_numbers<[1], [0], [0], [1], [0, 0, 1, 1], [], []>} : vector<16x32xf32>, vector<32x128xf32>, vector<16x128xf32> -> vector<16x128xf32>
    %c0_3 = arith.constant 0 : index
    %c0_4 = arith.constant 0 : index
    %3 = vector.load %arg3[%c0_3, %c0_4] : memref<16x1xf32, #tpu.memory_space<vmem>>, vector<16x1xf32>
    %4 = vector.broadcast %3 : vector<16x1xf32> to vector<16x128xf32>
    %5 = arith.addf %2, %4 : vector<16x128xf32>
    %c0_5 = arith.constant 0 : index
    %c0_6 = arith.constant 0 : index
    %6 = vector.load %arg4[%c0_5, %c0_6] : memref<16x1xf32, #tpu.memory_space<vmem>>, vector<16x1xf32>
    %7 = vector.broadcast %6 : vector<16x1xf32> to vector<16x128xf32>
    %8 = arith.mulf %5, %7 : vector<16x128xf32>
    %c0_7 = arith.constant 0 : index
    %c0_8 = arith.constant 0 : index
    %9 = vector.load %arg5[%c0_7, %c0_8] : memref<16x1xf32, #tpu.memory_space<vmem>>, vector<16x1xf32>
    %10 = vector.broadcast %9 : vector<16x1xf32> to vector<16x128xf32>
    %11 = arith.addf %8, %10 : vector<16x128xf32>
    %12 = math.tanh %11 : vector<16x128xf32>
    %c0_9 = arith.constant 0 : index
    %c0_10 = arith.constant 0 : index
    %13 = vector.load %arg6[%c0_9, %c0_10] : memref<32x16xf32, #tpu.memory_space<vmem>>, vector<32x16xf32>
    %cst_11 = arith.constant dense<0.000000e+00> : vector<32x128xf32>
    %14 = tpu.matmul %13, %12, %cst_11 {dimension_numbers = #tpu.dot_dimension_numbers<[1], [0], [0], [1], [0, 0, 1, 1], [], []>} : vector<32x16xf32>, vector<16x128xf32>, vector<32x128xf32> -> vector<32x128xf32>
    %c0_12 = arith.constant 0 : index
    %c0_13 = arith.constant 0 : index
    %15 = vector.load %arg7[%c0_12, %c0_13] : memref<32x1xf32, #tpu.memory_space<vmem>>, vector<32x1xf32>
    %16 = vector.broadcast %15 : vector<32x1xf32> to vector<32x128xf32>
    %17 = arith.addf %14, %16 : vector<32x128xf32>
    %c0_14 = arith.constant 0 : index
    %c0_15 = arith.constant 0 : index
    %18 = vector.load %arg8[%c0_14, %c0_15] : memref<32x1xf32, #tpu.memory_space<vmem>>, vector<32x1xf32>
    %19 = vector.broadcast %18 : vector<32x1xf32> to vector<32x128xf32>
    %20 = arith.mulf %17, %19 : vector<32x128xf32>
    %c0_16 = arith.constant 0 : index
    %c0_17 = arith.constant 0 : index
    %21 = vector.load %arg9[%c0_16, %c0_17] : memref<32x1xf32, #tpu.memory_space<vmem>>, vector<32x1xf32>
    %22 = vector.broadcast %21 : vector<32x1xf32> to vector<32x128xf32>
    %23 = arith.addf %20, %22 : vector<32x128xf32>
    %24 = math.tanh %23 : vector<32x128xf32>
    %c0_18 = arith.constant 0 : index
    %c0_19 = arith.constant 0 : index
    %25 = vector.load %arg10[%c0_18, %c0_19] : memref<48x32xf32, #tpu.memory_space<vmem>>, vector<48x32xf32>
    %cst_20 = arith.constant dense<0.000000e+00> : vector<48x128xf32>
    %26 = tpu.matmul %25, %24, %cst_20 {dimension_numbers = #tpu.dot_dimension_numbers<[1], [0], [0], [1], [0, 0, 1, 1], [], []>} : vector<48x32xf32>, vector<32x128xf32>, vector<48x128xf32> -> vector<48x128xf32>
    %c0_21 = arith.constant 0 : index
    %c0_22 = arith.constant 0 : index
    %27 = vector.load %arg11[%c0_21, %c0_22] : memref<48x1xf32, #tpu.memory_space<vmem>>, vector<48x1xf32>
    %28 = vector.broadcast %27 : vector<48x1xf32> to vector<48x128xf32>
    %29 = arith.addf %26, %28 : vector<48x128xf32>
    %c0_23 = arith.constant 0 : index
    %c0_24 = arith.constant 0 : index
    %30 = vector.load %arg12[%c0_23, %c0_24] : memref<48x128xf32, #tpu.memory_space<vmem>>, vector<48x128xf32>
    tpu.vector_store %arg12[%c0_23, %c0_24], %29 {strides = array<i32>} : memref<48x128xf32, #tpu.memory_space<vmem>>, vector<48x128xf32>,
    return
  }
  func.func @transform_0(%arg0: i32) -> (i32, i32) {
    %c0_i32 = arith.constant 0 : i32
    %c0_i32_0 = arith.constant 0 : i32
    return %c0_i32, %arg0 : i32, i32
  }
  func.func @transform_1(%arg0: i32) -> (i32, i32) {
    %c0_i32 = arith.constant 0 : i32
    %c0_i32_0 = arith.constant 0 : i32
    %c0_i32_1 = arith.constant 0 : i32
    return %c0_i32, %c0_i32_0 : i32, i32
  }
  func.func @transform_2(%arg0: i32) -> (i32, i32) {
    %c0_i32 = arith.constant 0 : i32
    %c0_i32_0 = arith.constant 0 : i32
    %c0_i32_1 = arith.constant 0 : i32
    return %c0_i32, %c0_i32_0 : i32, i32
  }
  func.func @transform_3(%arg0: i32) -> (i32, i32) {
    %c0_i32 = arith.constant 0 : i32
    %c0_i32_0 = arith.constant 0 : i32
    %c0_i32_1 = arith.constant 0 : i32
    return %c0_i32, %c0_i32_0 : i32, i32
  }
  func.func @transform_4(%arg0: i32) -> (i32, i32) {
    %c0_i32 = arith.constant 0 : i32
    %c0_i32_0 = arith.constant 0 : i32
    %c0_i32_1 = arith.constant 0 : i32
    return %c0_i32, %c0_i32_0 : i32, i32
  }
  func.func @transform_5(%arg0: i32) -> (i32, i32) {
    %c0_i32 = arith.constant 0 : i32
    %c0_i32_0 = arith.constant 0 : i32
    %c0_i32_1 = arith.constant 0 : i32
    return %c0_i32, %c0_i32_0 : i32, i32
  }
  func.func @transform_6(%arg0: i32) -> (i32, i32) {
    %c0_i32 = arith.constant 0 : i32
    %c0_i32_0 = arith.constant 0 : i32
    %c0_i32_1 = arith.constant 0 : i32
    return %c0_i32, %c0_i32_0 : i32, i32
  }
  func.func @transform_7(%arg0: i32) -> (i32, i32) {
    %c0_i32 = arith.constant 0 : i32
    %c0_i32_0 = arith.constant 0 : i32
    %c0_i32_1 = arith.constant 0 : i32
    return %c0_i32, %c0_i32_0 : i32, i32
  }
  func.func @transform_8(%arg0: i32) -> (i32, i32) {
    %c0_i32 = arith.constant 0 : i32
    %c0_i32_0 = arith.constant 0 : i32
    %c0_i32_1 = arith.constant 0 : i32
    return %c0_i32, %c0_i32_0 : i32, i32
  }
  func.func @transform_9(%arg0: i32) -> (i32, i32) {
    %c0_i32 = arith.constant 0 : i32
    %c0_i32_0 = arith.constant 0 : i32
    %c0_i32_1 = arith.constant 0 : i32
    return %c0_i32, %c0_i32_0 : i32, i32
  }
  func.func @transform_10(%arg0: i32) -> (i32, i32) {
    %c0_i32 = arith.constant 0 : i32
    %c0_i32_0 = arith.constant 0 : i32
    %c0_i32_1 = arith.constant 0 : i32
    return %c0_i32, %c0_i32_0 : i32, i32
  }
  func.func @transform_11(%arg0: i32) -> (i32, i32) {
    %c0_i32 = arith.constant 0 : i32
    %c0_i32_0 = arith.constant 0 : i32
    return %c0_i32, %arg0 : i32, i32
  }
}

</mosaic_0001>

<bundles_post_ra>
// kernel: tpu_custom_call.1
= control target key start
LH: loop header
LB: loop body
LE: loop exit
PB: predicated region body
PF: predicated region fallthrough
CT: control target
= control target key end

     0   :  { %v427_v3 = vmov 0   ;;  %vm57_vm0 = vcmask 261120   ;;  %s622_s0 = inlined_call_operand.vmem [shape: f32[32,128], index: 0, kind: input, shape index: {}]   ;;  %s623_s1 = inlined_call_operand.vmem [shape: f32[16,32], index: 1, kind: input, shape index: {}]   ;;  %s624_s2 = inlined_call_operand.vmem [shape: f32[16,1], index: 2, kind: input, shape index: {}]   ;;  %s625_s3 = inlined_call_operand.vmem [shape: f32[16,1], index: 3, kind: input, shape index: {}]   ;;  %s626_s4 = inlined_call_operand.vmem [shape: f32[16,1], index: 4, kind: input, shape index: {}]   ;;  %s627_s5 = inlined_call_operand.vmem [shape: f32[32,16], index: 5, kind: input, shape index: {}]   ;;  %s628_s6 = inlined_call_operand.vmem [shape: f32[32,1], index: 6, kind: input, shape index: {}]   ;;  %s629_s7 = inlined_call_operand.vmem [shape: f32[32,1], index: 7, kind: input, shape index: {}]   ;;  %s630_s8 = inlined_call_operand.vmem [shape: f32[32,1], index: 8, kind: input, shape index: {}]   ;;  %s631_s9 = inlined_call_operand.vmem [shape: f32[48,32], index: 9, kind: input, shape index: {}]   ;;  %s632_s10 = inlined_call_operand.vmem [shape: f32[48,1], index: 10, kind: input, shape index: {}]   ;;  %s633_s11 = inlined_call_operand.hbm [shape: f32[48,128], index: 11, kind: output, shape index: {}]  }
   0x1   :  { %v42_v0 = vld [vmem:[%s622_s0 + $0x18] sm:$0xff]  ;;  %v102_v1 = vld [vmem:[%s626_s4 + $0x8] sm:$0xff]  ;;  %388 = vset.pattern.permute.xlu2 %v427_v3  ;;  %387 = vset.pattern.permute.xlu1 %v427_v3  ;;  %v41_v5 = vld [vmem:[%s622_s0 + $0x10] sm:$0xff] }
   0x2   :  { %v88_v2 = vld [vmem:[%s625_s3 + $0x8] sm:$0xff]  ;;  %386 = vset.pattern.permute.xlu0 %v427_v3  ;;  %76 = vmatpush.msra.mxu0 %v42_v0  ;;  %v39_v7 = vld [vmem:[%s622_s0] sm:$0xff] }
   0x3   :  { %v46_v4 = vld [vmem:[%s624_s2 + $0x8] sm:$0xff]  ;;  %110 = vperm.xlu2 %388, %v102_v1   ;;  %96 = vperm.xlu1 %387, %v88_v2   ;;  %v43_v8 = vld [vmem:[%s623_s1] sm:$0xff] }
   0x4   :  { %v40_v6 = vld [vmem:[%s622_s0 + $0x8] sm:$0xff]  ;;  %54 = vperm.xlu0 %386, %v46_v4   ;;  %77 = vmatpush.msra.mxu0 %v41_v5 }
   0x6   :  { %78 = vmatpush.msra.mxu0 %v40_v6 }
   0x7   :  { %16 = vsyncpa [#allocation3], 0  ;;  %v101_v9 = vld [vmem:[%s626_s4] sm:$0xff]  ;;  %v44_v12 = vld [vmem:[%s623_s1 + $0x8] sm:$0xff]  ;;  %vm145_vm1 = vcmask 130048   ;;  %s430_s24 = smov 8  }
   0x8   :  { %79 = vmatpush.msra.mxu0 %v39_v7  ;;  %v87_v10 = vld [vmem:[%s625_s3] sm:$0xff]  ;;  %v190_v13 = vld [vmem:[%s629_s7 + $0x18] sm:$0xff]  ;;  %v123_v14 = vld [vmem:[%s628_s6 + $0x10] sm:$0xff] }
   0x9   :  { %366 = vmatmul.msk.f32.vlgmr.msra.gmra.mxu0 %vm57_vm0, %v43_v8  ;;  %v45_v11 = vld [vmem:[%s624_s2] sm:$0xff]  ;;  %v124_v15 = vld [vmem:[%s628_s6 + $0x18] sm:$0xff]  ;;  %v189_v17 = vld [vmem:[%s629_s7 + $0x10] sm:$0xff] }
   0xa   :  { %v218_v16 = vld [vmem:[%s630_s8 + $0x18] sm:$0xff]  ;;  %v122_v18 = vld [vmem:[%s628_s6 + $0x8] sm:$0xff]  ;;  %v217_v19 = vld [vmem:[%s630_s8 + $0x10] sm:$0xff] }
   0xb   :  { %105 = vperm.xlu2 %388, %v101_v9   ;;  %91 = vperm.xlu1 %387, %v87_v10   ;;  %v188_v20 = vld [vmem:[%s629_s7 + $0x8] sm:$0xff]  ;;  %v121_v21 = vld [vmem:[%s628_s6] sm:$0xff]  ;;  %v255_v25 = vld [vmem:[%s632_s10 + $0x10] sm:$0xff] }
   0xc   :  { %49 = vperm.xlu0 %386, %v45_v11   ;;  %v215_v22 = vld [vmem:[%s630_s8] sm:$0xff]  ;;  %v216_v23 = vld [vmem:[%s630_s8 + $0x8] sm:$0xff]  ;;  %v256_v30 = vld [vmem:[%s632_s10 + $0x18] sm:$0xff]  ;;  %s354_s8 = sshll.u32 %s633_s11, 4  ;;  %s355_s8 = int_to_ptr.hbm [resolvable:$true] %s354_s8 }
   0xd   :  { %v187_v24 = vld [vmem:[%s629_s7] sm:$0xff]  ;;  %v254_v26 = vld [vmem:[%s632_s10 + $0x8] sm:$0xff]  ;;  %v119_v49 = vld [vmem:[%s627_s5 + $0x10] sm:$0xff]  ;;  %s429_s7 = smov 128  }
   0xe   :  { %v253_v27 = vld [vmem:[%s632_s10] sm:$0xff]  ;;  %v258_v28 = vld [vmem:[%s632_s10 + $0x28] sm:$0xff]  ;;  %v120_v50 = vld [vmem:[%s627_s5 + $0x18] sm:$0xff] }
   0xf   :  { %v257_v29 = vld [vmem:[%s632_s10 + $0x20] sm:$0xff]  ;;  %v118_v48 = vld [vmem:[%s627_s5 + $0x8] sm:$0xff] }
  0x10   :  { %v117_v46 = vld [vmem:[%s627_s5] sm:$0xff] }
  0x11   :  { %367 = vmatmul.msk.f32.gmra.mxu0 %vm57_vm0, %v44_v12 }
  0x13   :  { %208 = vperm.xlu2 %388, %v190_v13   ;;  %137 = vperm.xlu1 %387, %v123_v14  }
  0x14   :  { %142 = vperm.xlu0 %386, %v124_v15  }
  0x1b   :  { %236 = vperm.xlu2 %388, %v218_v16   ;;  %203 = vperm.xlu1 %387, %v189_v17  }
  0x1c   :  { %132 = vperm.xlu0 %386, %v122_v18   ;;  %v247_v18 = vld [vmem:[%s631_s9] sm:$0xff] }
  0x23   :  { %231 = vperm.xlu2 %388, %v217_v19   ;;  %198 = vperm.xlu1 %387, %v188_v20   ;;  %v250_v19 = vld [vmem:[%s631_s9 + $0x18] sm:$0xff] }
  0x24   :  { %127 = vperm.xlu0 %386, %v121_v21   ;;  %v248_v21 = vld [vmem:[%s631_s9 + $0x8] sm:$0xff] }
  0x2b   :  { %221 = vperm.xlu2 %388, %v215_v22   ;;  %226 = vperm.xlu1 %387, %v216_v23   ;;  %v251_v22 = vld [vmem:[%s631_s9 + $0x20] sm:$0xff]  ;;  %v249_v23 = vld [vmem:[%s631_s9 + $0x10] sm:$0xff] }
  0x2c   :  { %193 = vperm.xlu0 %386, %v187_v24   ;;  %v252_v24 = vld [vmem:[%s631_s9 + $0x28] sm:$0xff]  ;;  %s428_s9 = smov [#allocation2]  }
  0x2d   :  { %s352_s4 = sshll.u32 %s428_s9, 4  ;;  %s353_s4 = int_to_ptr.vmem [resolvable:$true] %s352_s4 }
  0x33   :  { %271 = vperm.xlu2 %388, %v255_v25   ;;  %266 = vperm.xlu1 %387, %v254_v26  }
  0x34   :  { %261 = vperm.xlu0 %386, %v253_v27  }
  0x3b   :  { %286 = vperm.xlu2 %388, %v258_v28   ;;  %281 = vperm.xlu1 %387, %v257_v29  }
  0x3c   :  { %276 = vperm.xlu0 %386, %v256_v30  }
  0x5d   :  { %v111_v34 = vpop.permute.xlu2 %110 }
  0x65   :  { %v106_v42 = vpop.permute.xlu2 %105 }
  0x6d   :  { %v209_v54 = vpop.permute.xlu2 %208 }
  0x75   :  { %v97_v32 = vpop.permute.xlu1 %96  ;;  %v237_v58 = vpop.permute.xlu2 %236 }
  0x76   :  { %v55_v31 = vpop.permute.xlu0 %54 }
  0x7d   :  { %v92_v37 = vpop.permute.xlu1 %91  ;;  %v232_v63 = vpop.permute.xlu2 %231 }
  0x7e   :  { %v50_v35 = vpop.permute.xlu0 %49 }
  0x85   :  { %v138_v52 = vpop.permute.xlu1 %137  ;;  %v222_v13 = vpop.permute.xlu2 %221 }
  0x86   :  { %v81_v33 = vpop.f32.mrf.mxu0  ;;  %v143_v51 = vpop.permute.xlu0 %142 }
  0x87   :  { %v82_v36 = vadd.f32 %v81_v33, %v50_v35 }
  0x89   :  { %v99_v39 = vmul.f32 %v92_v37, %v82_v36 }
  0x8b   :  { %v113_v43 = vadd.f32 %v106_v42, %v99_v39 }
  0x8d   :  { %v204_v57 = vpop.permute.xlu1 %203 }
  0x8e   :  { %v84_v38 = vpop.f32.mrf.mxu0  ;;  %v133_v55 = vpop.permute.xlu0 %132 }
  0x8f   :  { %v85_v40 = vadd.f32 %v84_v38, %v55_v31 }
  0x91   :  { %v100_v41 = vmul.f32 %v97_v32, %v85_v40  ;;  %v272_v32 = vpop.permute.xlu2 %271 }
  0x93   :  { %v114_v44 = vadd.f32 %v111_v34, %v100_v41 }
  0x95   :  { %389 = vtanh.f32 %v114_v44  ;;  %v199_v61 = vpop.permute.xlu1 %198 }
  0x96   :  { %391 = vtanh.f32 %v113_v43  ;;  %v128_v60 = vpop.permute.xlu0 %127 }
  0x99   :  { %v287_v38 = vpop.permute.xlu2 %286 }
  0x9b   :  { %v390_v45 = vpop.eup %389 }
  0x9c   :  { %172 = vmatpush.msra.mxu1 %v390_v45  ;;  %v392_v47 = vpop.eup %391 }
  0x9d   :  { %v227_v11 = vpop.permute.xlu1 %226 }
  0x9e   :  { %173 = vmatpush.msra.mxu1 %v392_v47  ;;  %v194_v7 = vpop.permute.xlu0 %193 }
  0x9f   :  { %368 = vmatmul.msk.f32.vlgmr.msra.gmra.mxu1 %vm145_vm1, %v117_v46 }
  0xa5   :  { %v267_v26 = vpop.permute.xlu1 %266 }
  0xa6   :  { %v262_v25 = vpop.permute.xlu0 %261 }
  0xa7   :  { %369 = vmatmul.msk.f32.gmra.mxu1 %vm145_vm1, %v118_v48 }
  0xad   :  { %v282_v33 = vpop.permute.xlu1 %281 }
  0xae   :  { %v277_v27 = vpop.permute.xlu0 %276 }
  0xaf   :  { %370 = vmatmul.msk.f32.gmra.mxu1 %vm145_vm1, %v119_v49 }
  0xb7   :  { %371 = vmatmul.msk.f32.gmra.mxu1 %vm145_vm1, %v120_v50 }
 0x11c   :  { %v175_v53 = vpop.f32.mrf.mxu1 }
 0x11d   :  { %v176_v2 = vadd.f32 %v175_v53, %v128_v60 }
 0x11f   :  { %v211_v8 = vmul.f32 %v194_v7, %v176_v2 }
 0x121   :  { %v239_v14 = vadd.f32 %v222_v13, %v211_v8 }
 0x124   :  { %v178_v56 = vpop.f32.mrf.mxu1 }
 0x125   :  { %v179_v0 = vadd.f32 %v178_v56, %v133_v55 }
 0x127   :  { %v212_v5 = vmul.f32 %v199_v61, %v179_v0 }
 0x129   :  { %v240_v12 = vadd.f32 %v227_v11, %v212_v5 }
 0x12c   :  { %v181_v59 = vpop.f32.mrf.mxu1 }
 0x12d   :  { %v182_v62 = vadd.f32 %v181_v59, %v138_v52 }
 0x12f   :  { %v213_v3 = vmul.f32 %v204_v57, %v182_v62 }
 0x131   :  { %v241_v9 = vadd.f32 %v232_v63, %v213_v3 }
 0x134   :  { %v184_v1 = vpop.f32.mrf.mxu1 }
 0x135   :  { %v185_v4 = vadd.f32 %v184_v1, %v143_v51 }
 0x137   :  { %v214_v6 = vmul.f32 %v209_v54, %v185_v4 }
 0x139   :  { %v242_v10 = vadd.f32 %v237_v58, %v214_v6 }
 0x13b   :  { %393 = vtanh.f32 %v242_v10 }
 0x13c   :  { %395 = vtanh.f32 %v241_v9 }
 0x13d   :  { %397 = vtanh.f32 %v240_v12 }
 0x13e   :  { %399 = vtanh.f32 %v239_v14 }
 0x141   :  { %v394_v15 = vpop.eup %393 }
 0x142   :  { %319 = vmatpush.msra.mxu2 %v394_v15  ;;  %378 = vmatpush.msra.mxu3 %v394_v15  ;;  %v396_v16 = vpop.eup %395 }
 0x143   :  { %v398_v17 = vpop.eup %397 }
 0x144   :  { %320 = vmatpush.msra.mxu2 %v396_v16  ;;  %379 = vmatpush.msra.mxu3 %v396_v16  ;;  %v400_v20 = vpop.eup %399 }
 0x146   :  { %321 = vmatpush.msra.mxu2 %v398_v17  ;;  %380 = vmatpush.msra.mxu3 %v398_v17 }
 0x148   :  { %322 = vmatpush.msra.mxu2 %v400_v20  ;;  %381 = vmatpush.msra.mxu3 %v400_v20 }
 0x149   :  { %372 = vmatmul.msk.f32.vlgmr.msra.gmra.mxu2 %vm57_vm0, %v247_v18  ;;  %375 = vmatmul.msk.f32.vlgmr.msra.gmra.mxu3 %vm57_vm0, %v250_v19 }
 0x151   :  { %373 = vmatmul.msk.f32.gmra.mxu2 %vm57_vm0, %v248_v21  ;;  %376 = vmatmul.msk.f32.gmra.mxu3 %vm57_vm0, %v251_v22 }
 0x159   :  { %374 = vmatmul.msk.f32.gmra.mxu2 %vm57_vm0, %v249_v23  ;;  %377 = vmatmul.msk.f32.gmra.mxu3 %vm57_vm0, %v252_v24 }
 0x1cc   :  { %v324_v28 = vpop.f32.mrf.mxu2  ;;  %v333_v29 = vpop.f32.mrf.mxu3 }
 0x1cd   :  { %v325_v30 = vadd.f32 %v324_v28, %v262_v25  ;;  %v334_v31 = vadd.f32 %v333_v29, %v277_v27 }
 0x1cf   :  { %342 = vst [vmem:[#allocation2] sm:$0xff] %v325_v30 }
 0x1d0   :  { %345 = vst [vmem:[#allocation2 + $0x18] sm:$0xff] %v334_v31 }
 0x1d4   :  { %v327_v34 = vpop.f32.mrf.mxu2  ;;  %v336_v35 = vpop.f32.mrf.mxu3 }
 0x1d5   :  { %v328_v36 = vadd.f32 %v327_v34, %v267_v26  ;;  %v337_v37 = vadd.f32 %v336_v35, %v282_v33 }
 0x1d7   :  { %343 = vst [vmem:[#allocation2 + $0x8] sm:$0xff] %v328_v36 }
 0x1d8   :  { %346 = vst [vmem:[#allocation2 + $0x20] sm:$0xff] %v337_v37 }
 0x1dc   :  { %v330_v39 = vpop.f32.mrf.mxu2  ;;  %v339_v40 = vpop.f32.mrf.mxu3 }
 0x1dd   :  { %v331_v41 = vadd.f32 %v330_v39, %v272_v32  ;;  %v340_v42 = vadd.f32 %v339_v40, %v287_v38 }
 0x1df   :  { %344 = vst [vmem:[#allocation2 + $0x10] sm:$0xff] %v331_v41 }
 0x1e0   :  { %347 = vst [vmem:[#allocation2 + $0x28] sm:$0xff] %v340_v42 }
 0x1e1   :  { %360 = dma.vmem_to_hbm [thread:$0]  %s353_s4, 768, %s355_s8, [#allocation3], %s429_s7, %s429_s7, %s430_s24  }
 0x1e2   :  { %425 = dma.done.wait [#allocation3], 768  }
 0x1e3   :  { %426 = vsyncadd [#allocation3], 4294966528 }
 0x1e4   :  { %365 = vsyncpa [#allocation3], 1 }

</bundles_post_ra>
